<compile_context>
chip_gen: v7x
topology: tpu7x:2x2x1
jax: 0.10.0
libtpu: 0.0.40
codegen_flags: <defaults>
</compile_context>

<pallas_src>
import functools
import numpy as np
import jax
import jax.numpy as jnp
from jax.experimental import pallas as pl
from jax.experimental.pallas import tpu as pltpu


NEG_INF = -1e30  # additive mask bias; exp() underflows to exactly 0 after max-subtraction


def _sdpa_kernel(q_ref, k_ref, v_ref, mask_ref, out_ref, attn_ref, *, inv_temper):
    """Fused scaled-dot-product attention for the whole batch in one invocation."""
    q = q_ref[...].astype(jnp.bfloat16)        # (B, Lq, dk)
    k = k_ref[...].astype(jnp.bfloat16)        # (B, Lk, dk)
    v = v_ref[...].astype(jnp.bfloat16)        # (B, Lk, dv)
    mask = mask_ref[...]                       # (B, Lq, Lk) f32, 1.0 = masked

    # Batched q @ k^T contracting the last dims directly (no transpose copy).
    s = jnp.einsum('bqd,bkd->bqk', q, k,
                   preferred_element_type=jnp.float32) * inv_temper
    # masked_fill_(mask, -inf)  ->  additive bias (one VPU fused mul-add).
    s = s + mask * NEG_INF

    # Softmax over keys, all in f32 (max-subtracted for stability).
    s_max = jnp.max(s, axis=-1, keepdims=True)
    p = jnp.exp(s - s_max)
    denom = jnp.sum(p, axis=-1, keepdims=True)
    attn = p * pl.reciprocal(denom, approx=True)

    # nn.Dropout(attention_dropout): eval-mode no-op.
    attn_ref[...] = attn
    out_ref[...] = jnp.einsum('bqk,bkd->bqd',
                              attn.astype(jnp.bfloat16), v,
                              preferred_element_type=jnp.float32
                              ).astype(out_ref.dtype)


def scaled_dot_product_attention(q, k, v, attn_mask=None, *, d_model):
    """Mirrors ScaledDotProductAttention.forward(q, k, v, attn_mask)."""
    B, Lq, dk = q.shape
    Bk, Lk, dv = v.shape
    assert k.shape == (B, Lk, dk) and Bk == B

    if attn_mask is None:
        mask_f = jnp.zeros((B, Lq, Lk), jnp.float32)
    else:
        assert attn_mask.shape == (B, Lq, Lk), (
            f'Attention mask shape {attn_mask.shape} mismatch with '
            f'Attention logit tensor shape {(B, Lq, Lk)}.')
        mask_f = attn_mask.astype(jnp.float32)   # 1.0 where masked (True)

    inv_temper = 1.0 / float(d_model ** 0.5)
    kernel = functools.partial(_sdpa_kernel, inv_temper=inv_temper)

    vmem = pl.BlockSpec(memory_space=pltpu.MemorySpace.VMEM)
    out, attn = pl.pallas_call(
        kernel,
        out_shape=(jax.ShapeDtypeStruct((B, Lq, dv), q.dtype),       # output
                   jax.ShapeDtypeStruct((B, Lq, Lk), jnp.float32)),  # attn
        in_specs=[vmem, vmem, vmem, vmem],
        out_specs=(pl.BlockSpec(memory_space=pltpu.MemorySpace.VMEM),
                   pl.BlockSpec(memory_space=pltpu.MemorySpace.VMEM)),
    )(q, k, v, mask_f)
    return out, attn


def _reference(q, k, v, attn_mask, d_model):
    """Pure-JAX f32 reference matching the PyTorch module."""
    s = jnp.einsum('bqd,bkd->bqk', q, k) / (d_model ** 0.5)
    if attn_mask is not None:
        s = jnp.where(attn_mask, -jnp.inf, s)
    attn = jax.nn.softmax(s, axis=-1)
    out = jnp.einsum('bqk,bkd->bqd', attn, v)
    return out, attn


if __name__ == "__main__":
    key = jax.random.PRNGKey(0)
    kq, kk, kv = jax.random.split(key, 3)

    # Small shapes consistent with the module's usage in parse_nk.py:
    # batch = n_head * mb = 2 * 2, seq = 8, d_k = d_v = 32, temper = sqrt(d_model).
    B, Lq, Lk, DK, DV = 4, 8, 8, 32, 32
    D_MODEL = 32

    q = 0.5 * jax.random.normal(kq, (B, Lq, DK), jnp.float32)
    k = 0.5 * jax.random.normal(kk, (B, Lk, DK), jnp.float32)
    v = 0.5 * jax.random.normal(kv, (B, Lk, DV), jnp.float32)

    # Padding-style attention mask (True = masked), same shape as the logits.
    lengths = jnp.array([8, 5, 7, 3], jnp.int32)
    key_pos = jnp.arange(Lk)[None, None, :]                     # (1, 1, Lk)
    attn_mask = jnp.broadcast_to(key_pos >= lengths[:, None, None], (B, Lq, Lk))

    out, attn = scaled_dot_product_attention(q, k, v, attn_mask, d_model=D_MODEL)
    out = jax.block_until_ready(out)
    attn = jax.block_until_ready(attn)

    out_ref, attn_ref = _reference(q, k, v, attn_mask, D_MODEL)

    assert out.shape == (B, Lq, DV) and attn.shape == (B, Lq, Lk)
    assert bool(jnp.all(jnp.isfinite(out))) and bool(jnp.all(jnp.isfinite(attn)))
    # bf16 MXU operands + approx reciprocal -> loose tolerance vs f32 reference.
    assert np.allclose(np.asarray(out), np.asarray(out_ref), atol=3e-2, rtol=3e-2)
    assert np.allclose(np.asarray(attn), np.asarray(attn_ref), atol=3e-2, rtol=3e-2)
    # masked key positions must get exactly zero attention weight
    assert float(jnp.max(jnp.where(attn_mask, attn, 0.0))) == 0.0

    print("KERNEL_OK")
</pallas_src>

<mosaic_0001>
module attributes {stable_mosaic.version = 11 : i64} {
  func.func @_sdpa_kernel(%arg0: memref<4x8x32xf32, #tpu.memory_space<vmem>>, %arg1: memref<4x8x32xf32, #tpu.memory_space<vmem>>, %arg2: memref<4x8x32xf32, #tpu.memory_space<vmem>>, %arg3: memref<4x8x8xf32, #tpu.memory_space<vmem>>, %arg4: memref<4x8x32xf32, #tpu.memory_space<vmem>>, %arg5: memref<4x8x8xf32, #tpu.memory_space<vmem>>) attributes {dimension_semantics = [], scalar_prefetch = 0 : i64, scratch_operands = 0 : i64, tpu.core_type = #tpu.core_type<tc>} {
    %c0 = arith.constant 0 : index
    %c0_0 = arith.constant 0 : index
    %c0_1 = arith.constant 0 : index
    %0 = vector.load %arg0[%c0, %c0_0, %c0_1] : memref<4x8x32xf32, #tpu.memory_space<vmem>>, vector<4x8x32xf32>
    %1 = arith.truncf %0 : vector<4x8x32xf32> to vector<4x8x32xbf16>
    %c0_2 = arith.constant 0 : index
    %c0_3 = arith.constant 0 : index
    %c0_4 = arith.constant 0 : index
    %2 = vector.load %arg1[%c0_2, %c0_3, %c0_4] : memref<4x8x32xf32, #tpu.memory_space<vmem>>, vector<4x8x32xf32>
    %3 = arith.truncf %2 : vector<4x8x32xf32> to vector<4x8x32xbf16>
    %c0_5 = arith.constant 0 : index
    %c0_6 = arith.constant 0 : index
    %c0_7 = arith.constant 0 : index
    %4 = vector.load %arg2[%c0_5, %c0_6, %c0_7] : memref<4x8x32xf32, #tpu.memory_space<vmem>>, vector<4x8x32xf32>
    %5 = arith.truncf %4 : vector<4x8x32xf32> to vector<4x8x32xbf16>
    %c0_8 = arith.constant 0 : index
    %c0_9 = arith.constant 0 : index
    %c0_10 = arith.constant 0 : index
    %6 = vector.load %arg3[%c0_8, %c0_9, %c0_10] : memref<4x8x8xf32, #tpu.memory_space<vmem>>, vector<4x8x8xf32>
    "tpu.trace_start"() <{level = 10 : i32, message = "bqd,bkd->bqk"}> : () -> ()
    %cst = arith.constant dense<0.000000e+00> : vector<4x8x8xf32>
    %7 = tpu.matmul %1, %3, %cst {dimension_numbers = #tpu.dot_dimension_numbers<[2], [2], [1], [1], [0, 0, 0, 1, 1, 1], [0], [0]>} : vector<4x8x32xbf16>, vector<4x8x32xbf16>, vector<4x8x8xf32> -> vector<4x8x8xf32>
    "tpu.trace_stop"() : () -> ()
    %cst_11 = arith.constant 0.176776692 : f32
    %8 = vector.broadcast %cst_11 : f32 to vector<4x8x8xf32>
    %9 = arith.mulf %7, %8 : vector<4x8x8xf32>
    %cst_12 = arith.constant -1.000000e+30 : f32
    %10 = vector.broadcast %cst_12 : f32 to vector<4x8x8xf32>
    %11 = arith.mulf %6, %10 : vector<4x8x8xf32>
    %12 = arith.addf %9, %11 : vector<4x8x8xf32>
    %cst_13 = arith.constant dense<0xFF800000> : vector<4x8xf32>
    %13 = vector.multi_reduction <maximumf>, %12, %cst_13 [2] : vector<4x8x8xf32> to vector<4x8xf32>
    %14 = vector.shape_cast %13 : vector<4x8xf32> to vector<4x8x1xf32>
    %15 = vector.broadcast %14 : vector<4x8x1xf32> to vector<4x8x8xf32>
    %16 = arith.subf %12, %15 : vector<4x8x8xf32>
    %17 = math.exp %16 : vector<4x8x8xf32>
    %cst_14 = arith.constant dense<0.000000e+00> : vector<4x8xf32>
    %18 = vector.multi_reduction <add>, %17, %cst_14 [2] : vector<4x8x8xf32> to vector<4x8xf32>
    %19 = vector.shape_cast %18 : vector<4x8xf32> to vector<4x8x1xf32>
    %20 = tpu.reciprocal %19 {approx = true} : vector<4x8x1xf32> -> vector<4x8x1xf32>
    %21 = vector.broadcast %20 : vector<4x8x1xf32> to vector<4x8x8xf32>
    %22 = arith.mulf %17, %21 : vector<4x8x8xf32>
    %c0_15 = arith.constant 0 : index
    %c0_16 = arith.constant 0 : index
    %c0_17 = arith.constant 0 : index
    %23 = vector.load %arg5[%c0_15, %c0_16, %c0_17] : memref<4x8x8xf32, #tpu.memory_space<vmem>>, vector<4x8x8xf32>
    tpu.vector_store %arg5[%c0_15, %c0_16, %c0_17], %22 {strides = array<i32>} : memref<4x8x8xf32, #tpu.memory_space<vmem>>, vector<4x8x8xf32>,
    %24 = arith.truncf %22 : vector<4x8x8xf32> to vector<4x8x8xbf16>
    "tpu.trace_start"() <{level = 10 : i32, message = "bqk,bkd->bqd"}> : () -> ()
    %cst_18 = arith.constant dense<0.000000e+00> : vector<4x8x32xf32>
    %25 = tpu.matmul %24, %5, %cst_18 {dimension_numbers = #tpu.dot_dimension_numbers<[2], [1], [1], [2], [0, 0, 0, 1, 1, 2], [0], [0]>} : vector<4x8x8xbf16>, vector<4x8x32xbf16>, vector<4x8x32xf32> -> vector<4x8x32xf32>
    "tpu.trace_stop"() : () -> ()
    %c0_19 = arith.constant 0 : index
    %c0_20 = arith.constant 0 : index
    %c0_21 = arith.constant 0 : index
    %26 = vector.load %arg4[%c0_19, %c0_20, %c0_21] : memref<4x8x32xf32, #tpu.memory_space<vmem>>, vector<4x8x32xf32>
    tpu.vector_store %arg4[%c0_19, %c0_20, %c0_21], %25 {strides = array<i32>} : memref<4x8x32xf32, #tpu.memory_space<vmem>>, vector<4x8x32xf32>,
    return
  }
}

</mosaic_0001>

<bundles_post_ra>
// kernel: tpu_custom_call.1
= control target key start
LH: loop header
LB: loop body
LE: loop exit
PB: predicated region body
PF: predicated region fallthrough
CT: control target
= control target key end

     0   :  { %11 = vsyncpa [#allocation3], 0  ;;  %s1019_s0 = inlined_call_operand.hbm [shape: f32[4,8,32], index: 0, kind: input, shape index: {}]   ;;  %s1020_s1 = inlined_call_operand.hbm [shape: f32[4,8,32], index: 1, kind: input, shape index: {}]   ;;  %s1021_s2 = inlined_call_operand.hbm [shape: f32[4,8,32], index: 2, kind: input, shape index: {}]   ;;  %s1022_s3 = inlined_call_operand.hbm [shape: f32[4,8,8], index: 3, kind: input, shape index: {}]   ;;  %s1023_s4 = inlined_call_operand.hbm [shape: f32[4,8,32], index: 4, kind: output, shape index: {0}]   ;;  %s1024_s5 = inlined_call_operand.hbm [shape: f32[4,8,8], index: 5, kind: output, shape index: {1}]  }
   0x1   :  { %12 = vsyncpa [#allocation6], 0 }
   0x2   :  { %13 = vsyncpa [#allocation9], 0 }
   0x3   :  { %14 = vsyncpa [#allocation4], 0 }
   0x4   :  { %15 = vsyncpa [#allocation12], 0  ;;  %s819_s18 = smov [#allocation5]   ;;  %s820_s20 = smov [#allocation2]  }
   0x5   :  { %s33_s19 = sshll.u32 %s819_s18, 4  ;;  %s21_s21 = sshll.u32 %s820_s20, 4  ;;  %s34_s19 = int_to_ptr.vmem [resolvable:$true] %s33_s19  ;;  %s859_s21 = int_to_ptr.vmem [resolvable:$true] %s21_s21 }
   0x6   :  { %s677_s24 = scalar_lea.hbm %s1020_s1, 512 }
   0x7   :  { %p678_p0 = scmp.ne.s32.totalorder %s1020_s1, %s677_s24  ;;  %p681_p1 = scmp.lt.u32.totalorder %s677_s24, %s1020_s1 }
   0x9   :  { %p683_p2 = pnand %p681_p1, %p678_p0 }
   0xb   :  { %686 = shalt.err (!%p683_p2)
}
   0xc   :  { %s687_s29 = scalar_lea.vmem %s34_s19, 512  ;;  %p692_p4 = scmp.lt.s32.totalorder %s34_s19, %s34_s19 }
   0xd   :  { %p688_p3 = scmp.ne.s32.totalorder %s34_s19, %s687_s29  ;;  %p693_p5 = scmp.lt.s32.totalorder %s687_s29, %s687_s29 }
   0xf   :  { %p694_p6 = por %p693_p5, %p692_p4 }
  0x11   :  { %p695_p7 = pnand %p694_p6, %p688_p3 }
  0x13   :  { %698 = shalt.err (!%p695_p7)
}
  0x14   :  { %s821_s30 = smov 128   ;;  %s822_s6 = smov 8  }
  0x15   :  { %39 = dma.hbm_to_vmem [thread:$0]  %s1020_s1, 512, %s34_s19, [#allocation6], %s821_s30, %s821_s30, %s822_s6  }
  0x16   :  { %s699_s11 = scalar_lea.hbm %s1019_s0, 512 }
  0x17   :  { %p700_p8 = scmp.ne.s32.totalorder %s1019_s0, %s699_s11  ;;  %p703_p9 = scmp.lt.u32.totalorder %s699_s11, %s1019_s0 }
  0x19   :  { %p705_p10 = pnand %p703_p9, %p700_p8 }
  0x1b   :  { %708 = shalt.err (!%p705_p10)
}
  0x1c   :  { %s709_s16 = scalar_lea.vmem %s859_s21, 512  ;;  %p714_p12 = scmp.lt.s32.totalorder %s859_s21, %s859_s21 }
  0x1d   :  { %p710_p11 = scmp.ne.s32.totalorder %s859_s21, %s709_s16  ;;  %p715_p13 = scmp.lt.s32.totalorder %s709_s16, %s709_s16 }
  0x1f   :  { %p716_p0 = por %p715_p13, %p714_p12 }
  0x21   :  { %p717_p1 = pnand %p716_p0, %p710_p11 }
  0x23   :  { %720 = shalt.err (!%p717_p1)
}
  0x24   :  { %27 = dma.hbm_to_vmem [thread:$0]  %s1019_s0, 512, %s859_s21, [#allocation3], %s821_s30, %s821_s30, %s822_s6  }
  0x25   :  { %s823_s18 = smov [#allocation7]   ;;  %s824_s20 = smov [#allocation8]  }
  0x26   :  { %s45_s19 = sshll.u32 %s823_s18, 4  ;;  %s57_s22 = sshll.u32 %s824_s20, 4  ;;  %s46_s19 = int_to_ptr.vmem [resolvable:$true] %s45_s19  ;;  %s896_s22 = int_to_ptr.vmem [resolvable:$true] %s57_s22 }
  0x27   :  { %s721_s25 = scalar_lea.hbm %s1021_s2, 512 }
  0x28   :  { %p722_p2 = scmp.ne.s32.totalorder %s1021_s2, %s721_s25  ;;  %p725_p3 = scmp.lt.u32.totalorder %s721_s25, %s1021_s2 }
  0x2a   :  { %p727_p4 = pnand %p725_p3, %p722_p2 }
  0x2c   :  { %730 = shalt.err (!%p727_p4)
}
  0x2d   :  { %s731_s0 = scalar_lea.vmem %s46_s19, 512  ;;  %p736_p6 = scmp.lt.s32.totalorder %s46_s19, %s46_s19 }
  0x2e   :  { %p732_p5 = scmp.ne.s32.totalorder %s46_s19, %s731_s0  ;;  %p737_p7 = scmp.lt.s32.totalorder %s731_s0, %s731_s0 }
  0x30   :  { %p738_p8 = por %p737_p7, %p736_p6 }
  0x32   :  { %p739_p9 = pnand %p738_p8, %p732_p5 }
  0x34   :  { %742 = shalt.err (!%p739_p9)
}
  0x35   :  { %51 = dma.hbm_to_vmem [thread:$0]  %s1021_s2, 512, %s46_s19, [#allocation6], %s821_s30, %s821_s30, %s822_s6  }
  0x36   :  { %s743_s10 = scalar_lea.hbm %s1022_s3, 512 }
  0x37   :  { %p744_p10 = scmp.ne.s32.totalorder %s1022_s3, %s743_s10  ;;  %p747_p11 = scmp.lt.u32.totalorder %s743_s10, %s1022_s3 }
  0x39   :  { %p749_p12 = pnand %p747_p11, %p744_p10 }
  0x3b   :  { %752 = shalt.err (!%p749_p12)
}
  0x3c   :  { %s753_s15 = scalar_lea.vmem %s896_s22, 512  ;;  %p758_p0 = scmp.lt.s32.totalorder %s896_s22, %s896_s22 }
  0x3d   :  { %p754_p13 = scmp.ne.s32.totalorder %s896_s22, %s753_s15  ;;  %p759_p1 = scmp.lt.s32.totalorder %s753_s15, %s753_s15 }
  0x3f   :  { %p760_p2 = por %p759_p1, %p758_p0 }
  0x41   :  { %p761_p3 = pnand %p760_p2, %p754_p13 }
  0x43   :  { %764 = shalt.err (!%p761_p3)
}
  0x44   :  { %63 = dma.hbm_to_vmem [thread:$0]  %s1022_s3, 512, %s896_s22, [#allocation9], %s821_s30, %s821_s30, %s822_s6  }
  0x45   :  { %809 = dma.done.wait [#allocation3], 512  }
  0x46   :  { %810 = vsyncadd [#allocation3], 4294966784 }
  0x47   :  { %811 = dma.done.wait [#allocation6], 1024  }
  0x48   :  { %812 = vsyncadd [#allocation6], 4294966272 }
  0x49   :  { %813 = dma.done.wait [#allocation9], 512  }
  0x4a   :  { %814 = vsyncadd [#allocation9], 4294966784  ;;  %v825_v0 = vmov 0.0   ;;  %vm826_vm0 = vmmov 0   ;;  %v85_v1 = vld [vmem:[#allocation5] sm:$0xff]  ;;  %vm105_vm1 = vcmask 261120  }
  0x4b   :  { %603 = vmatprep.subr.bf16.mxu0 %v825_v0  ;;  %609 = vmatprep.subr.bf16.mxu1 %v825_v0  ;;  %v86_v2 = vld [vmem:[#allocation5 + $0x8] sm:$0xff]  ;;  %v89_v3 = vpack.c.bf16 %v85_v1, %v85_v1  ;;  %v87_v5 = vld [vmem:[#allocation5 + $0x10] sm:$0xff]  ;;  %v88_v6 = vld [vmem:[#allocation5 + $0x18] sm:$0xff]  ;;  %vm302_vm2 = vcmask 64512   ;;  %vm358_vm3 = vcmask 1043456   ;;  %s827_s3 = smov [#allocation11]  }
  0x4c   :  { %605 = vmatprep.mubr.msk.bf16.mxu0 %vm826_vm0, %v825_v0  ;;  %611 = vmatprep.mubr.msk.bf16.mxu1 %vm826_vm0, %v825_v0  ;;  %v90_v4 = vpack.c.bf16 %v86_v2, %v86_v2  ;;  %v77_v9 = vld [vmem:[#allocation2] sm:$0xff]  ;;  %v78_v10 = vld [vmem:[#allocation2 + $0x8] sm:$0xff]  ;;  %v91_v11 = vpack.c.bf16 %v87_v5, %v87_v5  ;;  %v92_v12 = vpack.c.bf16 %v88_v6, %v88_v6  ;;  %v79_v17 = vld [vmem:[#allocation2 + $0x10] sm:$0xff]  ;;  %s561_s1 = sshll.u32 %s827_s3, 4  ;;  %s562_s1 = int_to_ptr.vmem [resolvable:$true] %s561_s1 }
  0x4d   :  { %v110_v7 = vsel %vm105_vm1, %v89_v3, 0  ;;  %v81_v13 = vpack.c.bf16 %v77_v9, %v77_v9  ;;  %v82_v14 = vpack.c.bf16 %v78_v10, %v78_v10  ;;  %v80_v18 = vld [vmem:[#allocation2 + $0x18] sm:$0xff]  ;;  %v83_v19 = vpack.c.bf16 %v79_v17, %v79_v17  ;;  %v101_v21 = vld [vmem:[#allocation8] sm:$0xff]  ;;  %v102_v22 = vld [vmem:[#allocation8 + $0x8] sm:$0xff]  ;;  %s765_s17 = scalar_lea.vmem %s562_s1, 512  ;;  %p770_p5 = scmp.lt.s32.totalorder %s562_s1, %s562_s1 }
  0x4e   :  { %v156_v8 = vsel %vm105_vm1, %v90_v4, 0  ;;  %604 = vmatpush3.bf16.xpose.msra.mxu0 %v110_v7  ;;  %v202_v15 = vsel %vm105_vm1, %v91_v11, 0  ;;  %v248_v16 = vsel %vm105_vm1, %v92_v12, 0  ;;  %v84_v20 = vpack.c.bf16 %v80_v18, %v80_v18  ;;  %v103_v37 = vld [vmem:[#allocation8 + $0x10] sm:$0xff]  ;;  %v104_v38 = vld [vmem:[#allocation8 + $0x18] sm:$0xff]  ;;  %v94_v17 = vld [vmem:[#allocation7 + $0x8] sm:$0xff]  ;;  %p766_p4 = scmp.ne.s32.totalorder %s562_s1, %s765_s17  ;;  %p771_p6 = scmp.lt.s32.totalorder %s765_s17, %s765_s17 }
  0x4f   :  { %610 = vmatpush3.bf16.xpose.msra.mxu1 %v156_v8  ;;  %615 = vmatprep.subr.bf16.mxu0 %v825_v0  ;;  %v294_v23 = vmul.f32 -1e+30, %v101_v21  ;;  %v295_v24 = vmul.f32 -1e+30, %v102_v22  ;;  %v296_v41 = vmul.f32 -1e+30, %v103_v37  ;;  %v98_v18 = vpack.c.bf16 %v94_v17, %v94_v17 }
  0x50   :  { %621 = vmatprep.subr.bf16.mxu1 %v825_v0  ;;  %v297_v42 = vmul.f32 -1e+30, %v104_v38  ;;  %v95_v22 = vld [vmem:[#allocation7 + $0x10] sm:$0xff]  ;;  %p772_p7 = por %p771_p6, %p770_p5 }
  0x52   :  { %p773_p8 = pnand %p772_p7, %p766_p4 }
  0x55   :  { %606 = vmatmul.mubr.msk.bf16.vlgmr.msra.gmra.mrb[0].mxu0 %vm105_vm1, %v81_v13 }
  0x56   :  { %612 = vmatmul.mubr.msk.bf16.vlgmr.msra.gmra.mrb[0].mxu1 %vm105_vm1, %v82_v14  ;;  %616 = vmatpush3.bf16.xpose.msra.mxu0 %v202_v15  ;;  %v93_v14 = vld [vmem:[#allocation7] sm:$0xff] }
  0x57   :  { %622 = vmatpush3.bf16.xpose.msra.mxu1 %v248_v16  ;;  %617 = vmatprep.mubr.msk.bf16.mxu0 %vm826_vm0, %v825_v0  ;;  %v97_v15 = vpack.c.bf16 %v93_v14, %v93_v14 }
  0x58   :  { %623 = vmatprep.mubr.msk.bf16.mxu1 %vm826_vm0, %v825_v0  ;;  %627 = vmatprep.subr.bf16.mxu0 %v825_v0 }
  0x59   :  { %633 = vmatprep.subr.bf16.mxu1 %v825_v0  ;;  %v360_v16 = vsel %vm358_vm3, %v97_v15, 0 }
  0x5d   :  { %618 = vmatmul.mubr.msk.bf16.vlgmr.msra.gmra.mrb[4].mxu0 %vm105_vm1, %v83_v19  ;;  %v406_v19 = vsel %vm358_vm3, %v98_v18, 0 }
  0x5e   :  { %624 = vmatmul.mubr.msk.bf16.vlgmr.msra.gmra.mrb[4].mxu1 %vm105_vm1, %v84_v20  ;;  %629 = vmatprep.mubr.msk.bf16.mxu0 %vm826_vm0, %v825_v0 }
  0x5f   :  { %635 = vmatprep.mubr.msk.bf16.mxu1 %vm826_vm0, %v825_v0  ;;  %628 = vmatpush3.bf16.msra.mxu0 %v360_v16 }
  0x60   :  { %639 = vmatprep.subr.bf16.mxu0 %v825_v0  ;;  %634 = vmatpush3.bf16.msra.mxu1 %v406_v19 }
  0x61   :  { %645 = vmatprep.subr.bf16.mxu1 %v825_v0 }
 0x128   :  { %v146_v25 = vpop.f32.mrb[0].mxu0 }
 0x129   :  { %v192_v26 = vpop.f32.mrb[0].mxu1  ;;  %v290_v27 = vmul.f32 0.17677669, %v146_v25  ;;  %v607_v28 = vpop.f32.mrb[1].mxu0 }
 0x12a   :  { %v291_v29 = vmul.f32 0.17677669, %v192_v26  ;;  %v613_v30 = vpop.f32.mrb[1].mxu1  ;;  %v149_v31 = vpop.f32.mrb[2].mxu0  ;;  %v96_v26 = vld [vmem:[#allocation7 + $0x18] sm:$0xff] }
 0x12b   :  { %v195_v32 = vpop.f32.mrb[2].mxu1  ;;  %v608_v33 = vpop.f32.mrb[3].mxu0  ;;  %v298_v35 = vadd.f32 %v294_v23, %v290_v27  ;;  %v100_v31 = vpack.c.bf16 %v96_v26, %v96_v26 }
 0x12c   :  { %v614_v34 = vpop.f32.mrb[3].mxu1  ;;  %v299_v36 = vadd.f32 %v295_v24, %v291_v29  ;;  %v99_v24 = vpack.c.bf16 %v95_v22, %v95_v22 }
 0x12d   :  { %v303_v39 = vsel %vm302_vm2, %v298_v35, -inf }
 0x12e   :  { %304 = vmax.xlane.f32.xlu0 %v303_v39  ;;  %v306_v40 = vsel %vm302_vm2, %v299_v36, -inf  ;;  %v452_v30 = vsel %vm358_vm3, %v99_v24, 0 }
 0x130   :  { %v238_v43 = vpop.f32.mrb[4].mxu0 }
 0x131   :  { %v284_v44 = vpop.f32.mrb[4].mxu1  ;;  %v292_v45 = vmul.f32 0.17677669, %v238_v43  ;;  %v619_v46 = vpop.f32.mrb[5].mxu0 }
 0x132   :  { %v293_v47 = vmul.f32 0.17677669, %v284_v44  ;;  %v625_v48 = vpop.f32.mrb[5].mxu1  ;;  %307 = vmax.xlane.f32.xlu0 %v306_v40  ;;  %v241_v49 = vpop.f32.mrb[6].mxu0 }
 0x133   :  { %v287_v50 = vpop.f32.mrb[6].mxu1  ;;  %v620_v51 = vpop.f32.mrb[7].mxu0  ;;  %v300_v53 = vadd.f32 %v296_v41, %v292_v45 }
 0x134   :  { %v626_v52 = vpop.f32.mrb[7].mxu1  ;;  %v301_v54 = vadd.f32 %v297_v42, %v293_v47 }
 0x135   :  { %v309_v55 = vsel %vm302_vm2, %v300_v53, -inf }
 0x136   :  { %310 = vmax.xlane.f32.xlu1 %v309_v55  ;;  %v312_v56 = vsel %vm302_vm2, %v301_v54, -inf }
 0x13a   :  { %313 = vmax.xlane.f32.xlu1 %v312_v56 }
 0x1bb   :  { %v305_v57 = vpop.xlane.xlu0 %304 }
 0x1bc   :  { %v315_v58 = vsub.f32 %v298_v35, %v305_v57  ;;  %v498_v35 = vsel %vm358_vm3, %v100_v31, 0 }
 0x1be   :  { %v319_v59 = vmul.f32 1.442695, %v315_v58 }
 0x1bf   :  { %v308_v60 = vpop.xlane.xlu0 %307 }
 0x1c0   :  { %661 = vpow2.f32 %v319_v59  ;;  %v316_v61 = vsub.f32 %v299_v36, %v308_v60 }
 0x1c2   :  { %v321_v62 = vmul.f32 1.442695, %v316_v61 }
 0x1c3   :  { %v311_v63 = vpop.xlane.xlu1 %310 }
 0x1c4   :  { %663 = vpow2.f32 %v321_v62  ;;  %v317_v1 = vsub.f32 %v300_v53, %v311_v63 }
 0x1c6   :  { %v323_v2 = vmul.f32 1.442695, %v317_v1 }
 0x1c7   :  { %v314_v3 = vpop.xlane.xlu1 %313 }
 0x1c8   :  { %665 = vpow2.f32 %v323_v2  ;;  %v318_v4 = vsub.f32 %v301_v54, %v314_v3 }
 0x1ca   :  { %v662_v5 = vpop.eup %661  ;;  %v325_v6 = vmul.f32 1.442695, %v318_v4 }
 0x1cb   :  { %v327_v7 = vsel %vm302_vm2, %v662_v5, 0.0 }
 0x1cc   :  { %667 = vpow2.f32 %v325_v6  ;;  %328 = vadd.xlane.f32.xlu0 %v327_v7 }
 0x1ce   :  { %v664_v8 = vpop.eup %663 }
 0x1cf   :  { %v330_v9 = vsel %vm302_vm2, %v664_v8, 0.0 }
 0x1d0   :  { %331 = vadd.xlane.f32.xlu1 %v330_v9 }
 0x1d2   :  { %v666_v10 = vpop.eup %665 }
 0x1d3   :  { %v333_v11 = vsel %vm302_vm2, %v666_v10, 0.0 }
 0x1d4   :  { %334 = vadd.xlane.f32.xlu0 %v333_v11 }
 0x1d6   :  { %v668_v12 = vpop.eup %667 }
 0x1d7   :  { %v336_v13 = vsel %vm302_vm2, %v668_v12, 0.0 }
 0x1d8   :  { %337 = vadd.xlane.f32.xlu1 %v336_v13 }
 0x259   :  { %v329_v20 = vpop.xlane.xlu0 %328 }
 0x25a   :  { %669 = vrcp.f32 %v329_v20 }
 0x25d   :  { %v332_v21 = vpop.xlane.xlu1 %331 }
 0x25e   :  { %671 = vrcp.f32 %v332_v21 }
 0x261   :  { %v335_v23 = vpop.xlane.xlu0 %334 }
 0x262   :  { %673 = vrcp.f32 %v335_v23 }
 0x264   :  { %v670_v25 = vpop.eup %669 }
 0x265   :  { %v343_v27 = vmul.f32 %v670_v25, %v662_v5  ;;  %v338_v28 = vpop.xlane.xlu1 %337 }
 0x266   :  { %675 = vrcp.f32 %v338_v28 }
 0x267   :  { %347 = vst.msk [vmem:[#allocation11] sm:$0xff] %vm302_vm2, %v343_v27  ;;  %v351_v29 = vpack.c.bf16 %v343_v27, %v343_v27 }
 0x268   :  { %v672_v32 = vpop.eup %671 }
 0x269   :  { %v344_v33 = vmul.f32 %v672_v32, %v664_v8  ;;  %630 = vmatmul.mubr.msk.bf16.vlgmr.msra.gmra.mrb[8].mxu0 %vm302_vm2, %v351_v29 }
 0x26a   :  { %640 = vmatpush3.bf16.msra.mxu0 %v452_v30  ;;  %641 = vmatprep.mubr.msk.bf16.mxu0 %vm826_vm0, %v825_v0 }
 0x26b   :  { %348 = vst.msk [vmem:[#allocation11 + $0x8] sm:$0xff] %vm302_vm2, %v344_v33  ;;  %v352_v34 = vpack.c.bf16 %v344_v33, %v344_v33 }
 0x26c   :  { %v674_v36 = vpop.eup %673 }
 0x26d   :  { %v345_v37 = vmul.f32 %v674_v36, %v666_v10  ;;  %636 = vmatmul.mubr.msk.bf16.vlgmr.msra.gmra.mrb[8].mxu1 %vm302_vm2, %v352_v34 }
 0x26e   :  { %646 = vmatpush3.bf16.msra.mxu1 %v498_v35  ;;  %647 = vmatprep.mubr.msk.bf16.mxu1 %vm826_vm0, %v825_v0 }
 0x26f   :  { %349 = vst.msk [vmem:[#allocation11 + $0x10] sm:$0xff] %vm302_vm2, %v345_v37  ;;  %v353_v38 = vpack.c.bf16 %v345_v37, %v345_v37 }
 0x270   :  { %v676_v39 = vpop.eup %675 }
 0x271   :  { %v346_v40 = vmul.f32 %v676_v39, %v668_v12  ;;  %642 = vmatmul.mubr.msk.bf16.vlgmr.msra.gmra.mrb[12].mxu0 %vm302_vm2, %v353_v38 }
 0x273   :  { %350 = vst.msk [vmem:[#allocation11 + $0x18] sm:$0xff] %vm302_vm2, %v346_v40  ;;  %v354_v41 = vpack.c.bf16 %v346_v40, %v346_v40 }
 0x275   :  { %648 = vmatmul.mubr.msk.bf16.vlgmr.msra.gmra.mrb[12].mxu1 %vm302_vm2, %v354_v41 }
 0x276   :  { %776 = shalt.err (!%p773_p8)
}
 0x277   :  { %s777_s20 = scalar_lea.hbm %s1024_s5, 512 }
 0x278   :  { %p778_p9 = scmp.ne.s32.totalorder %s1024_s5, %s777_s20  ;;  %p781_p10 = scmp.lt.u32.totalorder %s777_s20, %s1024_s5 }
 0x27a   :  { %p783_p11 = pnand %p781_p10, %p778_p9 }
 0x27c   :  { %786 = shalt.err (!%p783_p11)
}
 0x27d   :  { %567 = dma.vmem_to_hbm [thread:$0]  %s562_s1, 512, %s1024_s5, [#allocation12], %s821_s30, %s821_s30, %s822_s6  }
 0x27e   :  { %s828_s28 = smov [#allocation10]  }
 0x27f   :  { %s549_s29 = sshll.u32 %s828_s28, 4  ;;  %s550_s29 = int_to_ptr.vmem [resolvable:$true] %s549_s29 }
 0x280   :  { %s787_s5 = scalar_lea.vmem %s550_s29, 512  ;;  %p792_p13 = scmp.lt.s32.totalorder %s550_s29, %s550_s29 }
 0x281   :  { %p788_p12 = scmp.ne.s32.totalorder %s550_s29, %s787_s5  ;;  %p793_p0 = scmp.lt.s32.totalorder %s787_s5, %s787_s5 }
 0x283   :  { %p794_p1 = por %p793_p0, %p792_p13 }
 0x285   :  { %p795_p2 = pnand %p794_p1, %p788_p12 }
 0x33c   :  { %v396_v0 = vpop.f32.mrb[8].mxu0 }
 0x33d   :  { %540 = vst.msk [vmem:[#allocation10] sm:$0xff] %vm105_vm1, %v396_v0  ;;  %v631_v42 = vpop.f32.mrb[9].mxu0 }
 0x33e   :  { %v399_v43 = vpop.f32.mrb[10].mxu0 }
 0x33f   :  { %v632_v44 = vpop.f32.mrb[11].mxu0 }
 0x340   :  { %v442_v45 = vpop.f32.mrb[8].mxu1 }
 0x341   :  { %541 = vst.msk [vmem:[#allocation10 + $0x8] sm:$0xff] %vm105_vm1, %v442_v45  ;;  %v637_v46 = vpop.f32.mrb[9].mxu1 }
 0x342   :  { %v445_v47 = vpop.f32.mrb[10].mxu1 }
 0x343   :  { %v638_v48 = vpop.f32.mrb[11].mxu1 }
 0x344   :  { %v488_v49 = vpop.f32.mrb[12].mxu0 }
 0x345   :  { %542 = vst.msk [vmem:[#allocation10 + $0x10] sm:$0xff] %vm105_vm1, %v488_v49  ;;  %v643_v50 = vpop.f32.mrb[13].mxu0 }
 0x346   :  { %v491_v51 = vpop.f32.mrb[14].mxu0 }
 0x347   :  { %v644_v52 = vpop.f32.mrb[15].mxu0 }
 0x348   :  { %v534_v53 = vpop.f32.mrb[12].mxu1 }
 0x349   :  { %543 = vst.msk [vmem:[#allocation10 + $0x18] sm:$0xff] %vm105_vm1, %v534_v53  ;;  %v649_v54 = vpop.f32.mrb[13].mxu1 }
 0x34a   :  { %v537_v55 = vpop.f32.mrb[14].mxu1 }
 0x34b   :  { %798 = shalt.err (!%p795_p2)
}
 0x34c   :  { %s799_s7 = scalar_lea.hbm %s1023_s4, 512 }
 0x34d   :  { %p800_p3 = scmp.ne.s32.totalorder %s1023_s4, %s799_s7  ;;  %p803_p4 = scmp.lt.u32.totalorder %s799_s7, %s1023_s4 }
 0x34f   :  { %p805_p5 = pnand %p803_p4, %p800_p3 }
 0x351   :  { %808 = shalt.err (!%p805_p5)
}
 0x352   :  { %555 = dma.vmem_to_hbm [thread:$0]  %s550_s29, 512, %s1023_s4, [#allocation4], %s821_s30, %s821_s30, %s822_s6   ;;  %v650_v56 = vpop.f32.mrb[15].mxu1 }
 0x353   :  { %815 = dma.done.wait [#allocation4], 512  }
 0x354   :  { %816 = vsyncadd [#allocation4], 4294966784 }
 0x355   :  { %817 = dma.done.wait [#allocation12], 512  }
 0x356   :  { %818 = vsyncadd [#allocation12], 4294966784 }
 0x357   :  { %574 = vsyncpa [#allocation3], 1 }
 0x358   :  { %575 = vsyncpa [#allocation6], 1 }
 0x359   :  { %576 = vsyncpa [#allocation9], 1 }
 0x35a   :  { %577 = vsyncpa [#allocation4], 1 }
 0x35b   :  { %578 = vsyncpa [#allocation12], 1 }

</bundles_post_ra>
